<compile_context>
chip_gen: v7x
topology: tpu7x:2x2x1
jax: 0.10.0
libtpu: 0.0.40
codegen_flags: <defaults>
</compile_context>

<pallas_src>
import functools

import jax
import jax.numpy as jnp
from jax.experimental import pallas as pl
from jax.experimental.pallas import tpu as pltpu


HIDDEN = 50
N_OUT = 5
HIDDEN_PAD = 64     # 50 -> 64 : sublane-aligned hidden activation tile
N_OUT_PAD = 8       # 5  -> 8  : transposed output block is a full 8-sublane tile
MAX_BLOCK_B = 32768  # absolute cap on the batch tile (code size / compile time)


def _round_up(x, m):
    return (x + m - 1) // m * m


# --------------------------------------------------------------------------- kernel
def _mixture_mlp_kernel(x_ref, w1_ref, b1_ref, w2t_ref, b2t_ref, out_ref):
    # layer_1 + ReLU  (dropout = identity in eval mode).
    x = x_ref[...]                                                    # (TB, F), native dtype
    h = jnp.dot(x, w1_ref[...], preferred_element_type=jnp.float32)
    h = jnp.maximum(h + b1_ref[...], 0.0)                             # (TB, 64) f32

    # layer_2_1, computed directly in transposed (lane-dense) form:
    #   ot[n, b] = sum_k w2t[n, k] * h[b, k]
    # Both operands contract on their minor dim (A @ B^T), which the MXU handles with
    # a transposed stationary-operand load -- no big XLU transpose of h is needed and
    # the result pops out dense as (8, TB).
    ot = jax.lax.dot_general(
        w2t_ref[...], h,
        dimension_numbers=(((1,), (1,)), ((), ())),
        preferred_element_type=jnp.float32) + b2t_ref[...]            # (8, TB)

    # Per-row heads selected by sublane index so the tile is written with a single
    # full (unmasked) store:
    #   row 0: identity (mean); rows 1..3: softplus (var/shape/rate);
    #   row 4: sigmoid (mixture_var); rows 5..7: padding (identity, sliced away).
    row = jax.lax.broadcasted_iota(jnp.int32, ot.shape, 0)
    softplus = jnp.maximum(ot, 0.0) + jnp.log1p(jnp.exp(-jnp.abs(ot)))  # stable softplus
    sigmoid = jax.nn.sigmoid(ot)
    out_ref[...] = jnp.where(
        row == 0, ot,
        jnp.where(row <= 3, softplus,
                  jnp.where(row == 4, sigmoid, ot)))


# ----------------------------------------------------------------- parameter prep
def prepare_params(w1, b1, w2, b2, x_dtype=jnp.float32):
    """Pad / transpose the MixtureModel weights once (hoisted out of the hot path).

    w1: (F, 50); b1: (50,); w2: (50, 5); b2: (5,)   (y = x @ W + b convention).
    """
    F = w1.shape[0]
    w1p = jnp.zeros((F, HIDDEN_PAD), x_dtype).at[:, :HIDDEN].set(w1.astype(x_dtype))
    b1p = jnp.zeros((1, HIDDEN_PAD), jnp.float32).at[0, :HIDDEN].set(
        b1.reshape(-1).astype(jnp.float32))
    w2t = jnp.zeros((N_OUT_PAD, HIDDEN_PAD), jnp.float32).at[:N_OUT, :HIDDEN].set(
        w2.astype(jnp.float32).T)
    b2t = jnp.zeros((N_OUT_PAD, 1), jnp.float32).at[:N_OUT, 0].set(
        b2.reshape(-1).astype(jnp.float32))
    return w1p, b1p, w2t, b2t


# ------------------------------------------------------------------- tile sizing
def _vmem_budget_bytes():
    try:
        cap = pltpu.get_tpu_info().vmem_capacity_bytes   # 128 MiB v5e/v6e, 64 MiB v7x
    except Exception:
        cap = 64 * 1024 * 1024                           # conservative (v7x) fallback
    return (cap * 3) // 4                                # headroom for compiler scratch


def _choose_batch_tile(B, F, x_itemsize, block_b, budget):
    """Largest multiple-of-128 batch tile that fits the VMEM budget, capped so the
    'parallel' batch axis still has >=2 grid steps (v7x has 2 TensorCores)."""
    # Per-row VMEM bytes (conservative): double-buffered x + loaded x value, f32 h
    # (counted at full-lane footprint), double-buffered (8, tb) output, small temps.
    per_row = 3 * F * x_itemsize + 2 * HIDDEN_PAD * 4 + 8 * N_OUT_PAD * 4
    fixed = 2 * (F * HIDDEN_PAD * x_itemsize
                 + HIDDEN_PAD * 4 + N_OUT_PAD * HIDDEN_PAD * 4 + N_OUT_PAD * 4)
    fixed += 1 << 20                                     # sems / compiler scratch slack
    tb = max(128, ((budget - fixed) // per_row) // 128 * 128)
    tb = min(tb, MAX_BLOCK_B)

    b_ceil = _round_up(B, 128)
    tb = min(tb, b_ceil)
    if block_b is not None:                              # user override, 128-aligned
        tb = min(tb, max(128, _round_up(block_b, 128)))
    # Keep >= 2 grid steps so both v7x TensorCores get work (no effect on v5e/v6e).
    if tb >= b_ceil and b_ceil >= 256:
        tb = _round_up(-(-B // 2), 128)
    return max(tb, 128)


# ----------------------------------------------------------------------- forward
@functools.partial(jax.jit, static_argnames=("block_b",))
def mixture_model_forward_prepared(x, w1p, b1p, w2t, b2t, *, block_b=None):
    """Eval-mode MixtureModel forward from pre-padded params (see prepare_params).

    Returns (mean, var, shape, rate, mixture_var), each (B,) float32.
    """
    B, F = x.shape
    # Stream x in its native dtype (bf16 halves HBM traffic on this memory-bound
    # kernel); only non-float / f64 inputs are dropped to f32.
    if x.dtype not in (jnp.float32, jnp.bfloat16, jnp.float16):
        x = x.astype(jnp.float32)
    if w1p.dtype != x.dtype:
        w1p = w1p.astype(x.dtype)

    orig_b = B
    if B < 128:                        # tiny batches: pad to one aligned block
        x = jnp.pad(x, ((0, 128 - B), (0, 0)))
        B = 128

    budget = _vmem_budget_bytes()
    tb = _choose_batch_tile(B, F, x.dtype.itemsize, block_b, budget)
    grid = (pl.cdiv(B, tb),)           # no host-side pad: last block is masked
    b_out = _round_up(B, 128)          # lane-dense output array width
    rows = grid[0] * tb

    cost = pl.CostEstimate(
        flops=2 * rows * (F * HIDDEN_PAD + HIDDEN_PAD * N_OUT_PAD),
        transcendentals=3 * rows * N_OUT_PAD,
        bytes_accessed=(B * F * x.dtype.itemsize
                        + F * HIDDEN_PAD * x.dtype.itemsize
                        + 4 * (HIDDEN_PAD + N_OUT_PAD * HIDDEN_PAD + N_OUT_PAD)
                        + 4 * N_OUT_PAD * b_out),
    )

    out = pl.pallas_call(
        _mixture_mlp_kernel,
        out_shape=jax.ShapeDtypeStruct((N_OUT_PAD, b_out), jnp.float32),
        grid=grid,
        in_specs=[
            pl.BlockSpec((tb, F), lambda i: (i, 0)),               # x streamed over batch
            pl.BlockSpec((F, HIDDEN_PAD), lambda i: (0, 0)),       # weights stay resident
            pl.BlockSpec((1, HIDDEN_PAD), lambda i: (0, 0)),
            pl.BlockSpec((N_OUT_PAD, HIDDEN_PAD), lambda i: (0, 0)),
            pl.BlockSpec((N_OUT_PAD, 1), lambda i: (0, 0)),
        ],
        out_specs=pl.BlockSpec((N_OUT_PAD, tb), lambda i: (0, i)),  # lane-dense (8, TB)
        compiler_params=pltpu.CompilerParams(
            dimension_semantics=("parallel",),
            vmem_limit_bytes=int(budget),
        ),
        cost_estimate=cost,
    )(x, w1p, b1p, w2t, b2t)

    mean = out[0, :orig_b]
    var = out[1, :orig_b]
    shape = out[2, :orig_b]
    rate = out[3, :orig_b]
    mixture_var = out[4, :orig_b]
    return mean, var, shape, rate, mixture_var


def mixture_model_forward(x, w1, b1, w2, b2, *, block_b=None):
    """Convenience wrapper from raw (unpadded) weights."""
    x_dtype = x.dtype if x.dtype in (jnp.float32, jnp.bfloat16, jnp.float16) else jnp.float32
    params = prepare_params(w1, b1, w2, b2, x_dtype=x_dtype)
    return mixture_model_forward_prepared(x, *params, block_b=block_b)


# -------------------------------------------------------------------------- test
def _init_params(key, n_features):
    """Deterministic PyTorch-Linear-style init (uniform +-1/sqrt(fan_in))."""
    k1, k2, k3, k4 = jax.random.split(key, 4)
    bound1 = 1.0 / jnp.sqrt(jnp.float32(n_features))
    bound2 = 1.0 / jnp.sqrt(jnp.float32(HIDDEN))
    w1 = jax.random.uniform(k1, (n_features, HIDDEN), jnp.float32, -bound1, bound1)
    b1 = jax.random.uniform(k2, (HIDDEN,), jnp.float32, -bound1, bound1)
    w2 = jax.random.uniform(k3, (HIDDEN, N_OUT), jnp.float32, -bound2, bound2)
    b2 = jax.random.uniform(k4, (N_OUT,), jnp.float32, -bound2, bound2)
    return w1, b1, w2, b2


def _reference_forward(x, w1, b1, w2, b2):
    h = jnp.maximum(x @ w1 + b1, 0.0)
    o = h @ w2 + b2
    return (o[:, 0], jax.nn.softplus(o[:, 1]), jax.nn.softplus(o[:, 2]),
            jax.nn.softplus(o[:, 3]), jax.nn.sigmoid(o[:, 4]))


if __name__ == "__main__":
    key = jax.random.PRNGKey(0)
    kx1, kp1, kx2, kp2 = jax.random.split(key, 4)
    names = ("mean", "var", "shape", "rate", "mixture_var")

    # Case 1: tiny batch (single padded block), prepared-params path.
    B1, F1 = 8, 32
    x1 = jax.random.normal(kx1, (B1, F1), dtype=jnp.float32)
    p1 = _init_params(kp1, F1)
    prepared = prepare_params(*p1)
    outs1 = jax.block_until_ready(mixture_model_forward_prepared(x1, *prepared))
    refs1 = _reference_forward(x1, *p1)
    for name, got, want in zip(names, outs1, refs1):
        assert got.shape == (B1,), (name, got.shape)
        assert jnp.allclose(got, want, atol=1e-5, rtol=1e-5), name

    # Case 2: multi-step grid with a partial final block (B not a multiple of 128).
    B2, F2 = 300, 40
    x2 = jax.random.normal(kx2, (B2, F2), dtype=jnp.float32)
    p2 = _init_params(kp2, F2)
    outs2 = jax.block_until_ready(mixture_model_forward(x2, *p2))
    refs2 = _reference_forward(x2, *p2)
    for name, got, want in zip(names, outs2, refs2):
        assert got.shape == (B2,), (name, got.shape)
        assert jnp.allclose(got, want, atol=1e-4, rtol=1e-4), name

    print("KERNEL_OK")
</pallas_src>

<mosaic_0001>
module attributes {stable_mosaic.version = 11 : i64} {
  func.func @_mixture_mlp_kernel(%arg0: i32, %arg1: memref<128x32xf32, #tpu.memory_space<vmem>>, %arg2: memref<32x64xf32, #tpu.memory_space<vmem>>, %arg3: memref<1x64xf32, #tpu.memory_space<vmem>>, %arg4: memref<8x64xf32, #tpu.memory_space<vmem>>, %arg5: memref<8x1xf32, #tpu.memory_space<vmem>>, %arg6: memref<8x128xf32, #tpu.memory_space<vmem>>) attributes {dimension_semantics = [#tpu.dimension_semantics<parallel>], iteration_bounds = array<i64: 1>, scalar_prefetch = 0 : i64, scratch_operands = 0 : i64, tpu.core_type = #tpu.core_type<tc>, window_params = [{transform_indices = @transform_0, window_bounds = array<i64: 128, 32>}, {pipeline_mode = #tpu.pipeline_mode<synchronous>, transform_indices = @transform_1, window_bounds = array<i64: 32, 64>}, {pipeline_mode = #tpu.pipeline_mode<synchronous>, transform_indices = @transform_2, window_bounds = array<i64: 1, 64>}, {pipeline_mode = #tpu.pipeline_mode<synchronous>, transform_indices = @transform_3, window_bounds = array<i64: 8, 64>}, {pipeline_mode = #tpu.pipeline_mode<synchronous>, transform_indices = @transform_4, window_bounds = array<i64: 8, 1>}, {transform_indices = @transform_5, window_bounds = array<i64: 8, 128>}]} {
    %c0 = arith.constant 0 : index
    %c0_0 = arith.constant 0 : index
    %0 = vector.load %arg1[%c0, %c0_0] : memref<128x32xf32, #tpu.memory_space<vmem>>, vector<128x32xf32>
    %c0_1 = arith.constant 0 : index
    %c0_2 = arith.constant 0 : index
    %1 = vector.load %arg2[%c0_1, %c0_2] : memref<32x64xf32, #tpu.memory_space<vmem>>, vector<32x64xf32>
    %cst = arith.constant dense<0.000000e+00> : vector<128x64xf32>
    %2 = tpu.matmul %0, %1, %cst {dimension_numbers = #tpu.dot_dimension_numbers<[1], [0], [0], [1], [0, 0, 1, 1], [], []>} : vector<128x32xf32>, vector<32x64xf32>, vector<128x64xf32> -> vector<128x64xf32>
    %c0_3 = arith.constant 0 : index
    %c0_4 = arith.constant 0 : index
    %3 = vector.load %arg3[%c0_3, %c0_4] : memref<1x64xf32, #tpu.memory_space<vmem>>, vector<1x64xf32>
    %4 = vector.broadcast %3 : vector<1x64xf32> to vector<128x64xf32>
    %5 = arith.addf %2, %4 : vector<128x64xf32>
    %cst_5 = arith.constant 0.000000e+00 : f32
    %6 = vector.broadcast %cst_5 : f32 to vector<128x64xf32>
    %7 = arith.maximumf %5, %6 : vector<128x64xf32>
    %c0_6 = arith.constant 0 : index
    %c0_7 = arith.constant 0 : index
    %8 = vector.load %arg4[%c0_6, %c0_7] : memref<8x64xf32, #tpu.memory_space<vmem>>, vector<8x64xf32>
    %cst_8 = arith.constant dense<0.000000e+00> : vector<8x128xf32>
    %9 = tpu.matmul %8, %7, %cst_8 {dimension_numbers = #tpu.dot_dimension_numbers<[1], [1], [0], [0], [0, 0, 1, 0], [], []>} : vector<8x64xf32>, vector<128x64xf32>, vector<8x128xf32> -> vector<8x128xf32>
    %c0_9 = arith.constant 0 : index
    %c0_10 = arith.constant 0 : index
    %10 = vector.load %arg5[%c0_9, %c0_10] : memref<8x1xf32, #tpu.memory_space<vmem>>, vector<8x1xf32>
    %11 = vector.broadcast %10 : vector<8x1xf32> to vector<8x128xf32>
    %12 = arith.addf %9, %11 : vector<8x128xf32>
    %13 = tpu.iota {dimensions = array<i32: 0>} : vector<8x128xi32>
    %cst_11 = arith.constant 0.000000e+00 : f32
    %14 = vector.broadcast %cst_11 : f32 to vector<8x128xf32>
    %15 = arith.maximumf %12, %14 : vector<8x128xf32>
    %16 = math.absf %12 : vector<8x128xf32>
    %cst_12 = arith.constant 0.000000e+00 : f32
    %17 = vector.broadcast %cst_12 : f32 to vector<8x128xf32>
    %18 = arith.subf %17, %16 : vector<8x128xf32>
    %19 = math.exp %18 : vector<8x128xf32>
    %20 = math.log1p %19 : vector<8x128xf32>
    %21 = arith.addf %15, %20 : vector<8x128xf32>
    %22 = arith.negf %12 : vector<8x128xf32>
    %23 = math.exp %22 : vector<8x128xf32>
    %cst_13 = arith.constant 1.000000e+00 : f32
    %24 = vector.broadcast %cst_13 : f32 to vector<8x128xf32>
    %25 = arith.addf %24, %23 : vector<8x128xf32>
    %26 = arith.divf %24, %25 : vector<8x128xf32>
    %c0_i32 = arith.constant 0 : i32
    %27 = vector.broadcast %c0_i32 : i32 to vector<8x128xi32>
    %28 = arith.cmpi eq, %13, %27 : vector<8x128xi32>
    %c3_i32 = arith.constant 3 : i32
    %29 = vector.broadcast %c3_i32 : i32 to vector<8x128xi32>
    %30 = arith.cmpi sle, %13, %29 : vector<8x128xi32>
    %c4_i32 = arith.constant 4 : i32
    %31 = vector.broadcast %c4_i32 : i32 to vector<8x128xi32>
    %32 = arith.cmpi eq, %13, %31 : vector<8x128xi32>
    %33 = arith.select %32, %26, %12 : vector<8x128xi1>, vector<8x128xf32>
    %34 = arith.select %30, %21, %33 : vector<8x128xi1>, vector<8x128xf32>
    %35 = arith.select %28, %12, %34 : vector<8x128xi1>, vector<8x128xf32>
    %c0_14 = arith.constant 0 : index
    %c0_15 = arith.constant 0 : index
    %36 = vector.load %arg6[%c0_14, %c0_15] : memref<8x128xf32, #tpu.memory_space<vmem>>, vector<8x128xf32>
    tpu.vector_store %arg6[%c0_14, %c0_15], %35 {strides = array<i32>} : memref<8x128xf32, #tpu.memory_space<vmem>>, vector<8x128xf32>,
    return
  }
  func.func @transform_0(%arg0: i32) -> (i32, i32) {
    %c0_i32 = arith.constant 0 : i32
    %c0_i32_0 = arith.constant 0 : i32
    return %arg0, %c0_i32 : i32, i32
  }
  func.func @transform_1(%arg0: i32) -> (i32, i32) {
    %c0_i32 = arith.constant 0 : i32
    %c0_i32_0 = arith.constant 0 : i32
    %c0_i32_1 = arith.constant 0 : i32
    return %c0_i32, %c0_i32_0 : i32, i32
  }
  func.func @transform_2(%arg0: i32) -> (i32, i32) {
    %c0_i32 = arith.constant 0 : i32
    %c0_i32_0 = arith.constant 0 : i32
    %c0_i32_1 = arith.constant 0 : i32
    return %c0_i32, %c0_i32_0 : i32, i32
  }
  func.func @transform_3(%arg0: i32) -> (i32, i32) {
    %c0_i32 = arith.constant 0 : i32
    %c0_i32_0 = arith.constant 0 : i32
    %c0_i32_1 = arith.constant 0 : i32
    return %c0_i32, %c0_i32_0 : i32, i32
  }
  func.func @transform_4(%arg0: i32) -> (i32, i32) {
    %c0_i32 = arith.constant 0 : i32
    %c0_i32_0 = arith.constant 0 : i32
    %c0_i32_1 = arith.constant 0 : i32
    return %c0_i32, %c0_i32_0 : i32, i32
  }
  func.func @transform_5(%arg0: i32) -> (i32, i32) {
    %c0_i32 = arith.constant 0 : i32
    %c0_i32_0 = arith.constant 0 : i32
    return %c0_i32, %arg0 : i32, i32
  }
}

</mosaic_0001>

<bundles_post_ra>
// kernel: mixture_model_forward_prepared.1
= control target key start
LH: loop header
LB: loop body
LE: loop exit
PB: predicated region body
PF: predicated region fallthrough
CT: control target
= control target key end

     0   :  { %vm47_vm0 = vcmask 261120   ;;  %v612_v22 = vmov 0.0|0.0   ;;  %vm613_vm1 = vmmov 0   ;;  %v614_v23 = vmov 0.0   ;;  %s765_s1 = inlined_call_operand.vmem [shape: f32[32,64], index: 1, kind: input, shape index: {}]   ;;  %s766_s0 = inlined_call_operand.vmem [shape: f32[128,32], index: 0, kind: input, shape index: {}]   ;;  %s767_s4 = inlined_call_operand.vmem [shape: f32[8,1], index: 4, kind: input, shape index: {}]   ;;  %s768_s2 = inlined_call_operand.vmem [shape: f32[1,64], index: 2, kind: input, shape index: {}]   ;;  %s769_s3 = inlined_call_operand.vmem [shape: f32[8,64], index: 3, kind: input, shape index: {}]   ;;  %s770_s5 = inlined_call_operand.vmem [shape: f32[8,128], index: 5, kind: output, shape index: {}]  }
   0x1   :  { %v36_v0 = vld [vmem:[%s765_s1] sm:$0xff]  ;;  %v37_v1 = vld [vmem:[%s765_s1 + $0x8] sm:$0xff]  ;;  %v38_v2 = vld [vmem:[%s765_s1 + $0x10] sm:$0xff]  ;;  %567 = vmatprep.subr.bf16.mxu1 %v612_v22  ;;  %556 = vmatprep.mubr.msk.f32.mxu1 %vm613_vm1, %v614_v23  ;;  %v615_v24 = vmov 0   ;;  %vm264_vm2 = vcmask 523264  }
   0x2   :  { %v559_v3 = vpack.c.bf16 %v37_v1, %v36_v0  ;;  %v39_v4 = vld [vmem:[%s765_s1 + $0x18] sm:$0xff]  ;;  %v20_v5 = vld [vmem:[%s766_s0] sm:$0xff]  ;;  %v21_v7 = vld [vmem:[%s766_s0 + $0x8] sm:$0xff]  ;;  %603 = vset.pattern.permute.xlu0 %v615_v24 }
   0x3   :  { %v563_v6 = vpack.c.bf16 %v39_v4, %v38_v2  ;;  %500 = vmatprep.mubr.msk.f32.mxu0 %vm47_vm0, %v20_v5  ;;  %v22_v8 = vld [vmem:[%s766_s0 + $0x10] sm:$0xff]  ;;  %v23_v9 = vld [vmem:[%s766_s0 + $0x18] sm:$0xff]  ;;  %v24_v10 = vld [vmem:[%s766_s0 + $0x20] sm:$0xff] }
   0x4   :  { %560 = vmatprep.subr.bf16.mxu0 %v559_v3  ;;  %v25_v11 = vld [vmem:[%s766_s0 + $0x28] sm:$0xff]  ;;  %v26_v12 = vld [vmem:[%s766_s0 + $0x30] sm:$0xff]  ;;  %v27_v13 = vld [vmem:[%s766_s0 + $0x38] sm:$0xff] }
   0x5   :  { %562 = vmatpush3.bf16.msra.mxu0 %v559_v3  ;;  %v28_v14 = vld [vmem:[%s766_s0 + $0x40] sm:$0xff]  ;;  %v29_v15 = vld [vmem:[%s766_s0 + $0x48] sm:$0xff]  ;;  %v30_v16 = vld [vmem:[%s766_s0 + $0x50] sm:$0xff] }
   0x6   :  { %564 = vmatprep.subr.bf16.mxu0 %v563_v6  ;;  %v31_v17 = vld [vmem:[%s766_s0 + $0x58] sm:$0xff]  ;;  %v32_v18 = vld [vmem:[%s766_s0 + $0x60] sm:$0xff]  ;;  %v33_v19 = vld [vmem:[%s766_s0 + $0x68] sm:$0xff] }
   0x7   :  { %v34_v20 = vld [vmem:[%s766_s0 + $0x70] sm:$0xff]  ;;  %v35_v21 = vld [vmem:[%s766_s0 + $0x78] sm:$0xff]  ;;  %v258_v25 = vld [vmem:[%s767_s4] sm:$0xff] }
   0x8   :  { %261 = vperm.xlu0 %603, %v258_v25   ;;  %v420_v26 = vld [vmem:[%s768_s2] ss:$0 sm:$0xff]  ;;  %vm731_vm3 = vmpackc.low %vm264_vm2, %vm264_vm2 }
   0x9   :  { %566 = vmatpush3.bf16.msra.mxu0 %v563_v6 }
   0xc   :  { %501 = vmatmul.mubr.msk.f32.vlgmr.msra.gmra.mrb[0].mxu0 %vm47_vm0, %v21_v7 }
   0xd   :  { %503 = vmatprep.mubr.msk.f32.mxu0 %vm47_vm0, %v22_v8 }
  0x10   :  { %504 = vmatmul.mubr.msk.f32.gmra.mrb[2].mxu0 %vm47_vm0, %v23_v9 }
  0x11   :  { %506 = vmatprep.mubr.msk.f32.mxu0 %vm47_vm0, %v24_v10 }
  0x14   :  { %507 = vmatmul.mubr.msk.f32.gmra.mrb[4].mxu0 %vm47_vm0, %v25_v11 }
  0x15   :  { %509 = vmatprep.mubr.msk.f32.mxu0 %vm47_vm0, %v26_v12 }
  0x18   :  { %510 = vmatmul.mubr.msk.f32.gmra.mrb[6].mxu0 %vm47_vm0, %v27_v13 }
  0x19   :  { %512 = vmatprep.mubr.msk.f32.mxu0 %vm47_vm0, %v28_v14 }
  0x1c   :  { %513 = vmatmul.mubr.msk.f32.gmra.mrb[8].mxu0 %vm47_vm0, %v29_v15 }
  0x1d   :  { %515 = vmatprep.mubr.msk.f32.mxu0 %vm47_vm0, %v30_v16 }
  0x20   :  { %516 = vmatmul.mubr.msk.f32.gmra.mrb[10].mxu0 %vm47_vm0, %v31_v17 }
  0x21   :  { %518 = vmatprep.mubr.msk.f32.mxu0 %vm47_vm0, %v32_v18 }
  0x24   :  { %519 = vmatmul.mubr.msk.f32.gmra.mrb[12].mxu0 %vm47_vm0, %v33_v19 }
  0x25   :  { %521 = vmatprep.mubr.msk.f32.mxu0 %vm47_vm0, %v34_v20  ;;  %v257_v20 = vld [vmem:[%s769_s3] sm:$0xff] }
  0x28   :  { %522 = vmatmul.mubr.msk.f32.gmra.mrb[14].mxu0 %vm47_vm0, %v35_v21 }
  0x87   :  { %v262_v21 = vpop.permute.xlu0 %261 }
  0xdf   :  { %v502_v27 = vpop.f32.mrb[0].mxu0 }
  0xe0   :  { %v168_v28 = vadd.f32 %v502_v27, %v420_v26  ;;  %v162_v29 = vpop.f32.mrb[1].mxu0 }
  0xe1   :  { %v163_v30 = vadd.f32 %v420_v26, %v162_v29 }
  0xe2   :  { %v242_v31 = vmax.f32 %v168_v28, 0.0 }
  0xe3   :  { %v241_v32 = vmax.f32 %v163_v30, 0.0  ;;  %v505_v33 = vpop.f32.mrb[2].mxu0 }
  0xe4   :  { %v178_v34 = vadd.f32 %v505_v33, %v420_v26  ;;  %v172_v35 = vpop.f32.mrb[3].mxu0 }
  0xe5   :  { %v568_v37 = vpack.c.bf16 %v242_v31, %v241_v32  ;;  %v173_v38 = vadd.f32 %v420_v26, %v172_v35 }
  0xe6   :  { %v244_v39 = vmax.f32 %v178_v34, 0.0  ;;  %v386_v34 = vlaneseq }
  0xe7   :  { %v243_v40 = vmax.f32 %v173_v38, 0.0  ;;  %570 = vmatpush3.bf16.xpose.msk.msra.mxu1 %vm731_vm3, %v568_v37  ;;  %v508_v41 = vpop.f32.mrb[4].mxu0 }
  0xe8   :  { %v188_v42 = vadd.f32 %v508_v41, %v420_v26  ;;  %571 = vmatprep.subr.bf16.mxu1 %v612_v22  ;;  %v182_v43 = vpop.f32.mrb[5].mxu0  ;;  %v387_v36 = vshrl.u32 %v386_v34, 7 }
  0xe9   :  { %v572_v44 = vpack.c.bf16 %v244_v39, %v243_v40  ;;  %v183_v45 = vadd.f32 %v420_v26, %v182_v43 }
  0xea   :  { %v246_v46 = vmax.f32 %v188_v42, 0.0  ;;  %vm411_vm5 = vcmp.eq.s32.totalorder %v387_v36, 4  ;;  %vm410_vm6 = vcmp.le.s32.totalorder %v387_v36, 3  ;;  %vm409_vm7 = vcmp.eq.s32.totalorder %v387_v36, 0 }
  0xeb   :  { %v245_v47 = vmax.f32 %v183_v45, 0.0  ;;  %v511_v48 = vpop.f32.mrb[6].mxu0 }
  0xec   :  { %v198_v49 = vadd.f32 %v511_v48, %v420_v26  ;;  %v192_v50 = vpop.f32.mrb[7].mxu0 }
  0xed   :  { %v576_v51 = vpack.c.bf16 %v246_v46, %v245_v47  ;;  %v193_v52 = vadd.f32 %v420_v26, %v192_v50 }
  0xee   :  { %v248_v53 = vmax.f32 %v198_v49, 0.0 }
  0xef   :  { %574 = vmatpush3.bf16.xpose.msk.msra.mxu1 %vm731_vm3, %v572_v44  ;;  %v247_v54 = vmax.f32 %v193_v52, 0.0  ;;  %v514_v55 = vpop.f32.mrb[8].mxu0 }
  0xf0   :  { %575 = vmatprep.subr.bf16.mxu1 %v612_v22  ;;  %v208_v56 = vadd.f32 %v514_v55, %v420_v26  ;;  %v202_v57 = vpop.f32.mrb[9].mxu0 }
  0xf1   :  { %v580_v58 = vpack.c.bf16 %v248_v53, %v247_v54  ;;  %v203_v59 = vadd.f32 %v420_v26, %v202_v57 }
  0xf2   :  { %v250_v60 = vmax.f32 %v208_v56, 0.0 }
  0xf3   :  { %v249_v61 = vmax.f32 %v203_v59, 0.0  ;;  %v517_v62 = vpop.f32.mrb[10].mxu0 }
  0xf4   :  { %v218_v63 = vadd.f32 %v517_v62, %v420_v26  ;;  %v212_v0 = vpop.f32.mrb[11].mxu0 }
  0xf5   :  { %v584_v1 = vpack.c.bf16 %v250_v60, %v249_v61  ;;  %v213_v2 = vadd.f32 %v420_v26, %v212_v0 }
  0xf6   :  { %v252_v3 = vmax.f32 %v218_v63, 0.0 }
  0xf7   :  { %578 = vmatpush3.bf16.xpose.msk.msra.mxu1 %vm731_vm3, %v576_v51  ;;  %v251_v4 = vmax.f32 %v213_v2, 0.0  ;;  %v520_v5 = vpop.f32.mrb[12].mxu0 }
  0xf8   :  { %579 = vmatprep.subr.bf16.mxu1 %v612_v22  ;;  %v228_v6 = vadd.f32 %v520_v5, %v420_v26  ;;  %v222_v7 = vpop.f32.mrb[13].mxu0 }
  0xf9   :  { %v588_v8 = vpack.c.bf16 %v252_v3, %v251_v4  ;;  %v223_v9 = vadd.f32 %v420_v26, %v222_v7 }
  0xfa   :  { %v254_v10 = vmax.f32 %v228_v6, 0.0 }
  0xfb   :  { %v253_v11 = vmax.f32 %v223_v9, 0.0  ;;  %v523_v12 = vpop.f32.mrb[14].mxu0 }
  0xfc   :  { %v238_v13 = vadd.f32 %v523_v12, %v420_v26  ;;  %v232_v14 = vpop.f32.mrb[15].mxu0 }
  0xfd   :  { %v592_v15 = vpack.c.bf16 %v254_v10, %v253_v11  ;;  %v233_v16 = vadd.f32 %v420_v26, %v232_v14 }
  0xfe   :  { %v256_v17 = vmax.f32 %v238_v13, 0.0 }
  0xff   :  { %582 = vmatpush3.bf16.xpose.msk.msra.mxu1 %vm731_vm3, %v580_v58  ;;  %v255_v18 = vmax.f32 %v233_v16, 0.0 }
 0x100   :  { %583 = vmatprep.subr.bf16.mxu1 %v612_v22 }
 0x101   :  { %v596_v19 = vpack.c.bf16 %v256_v17, %v255_v18 }
 0x107   :  { %586 = vmatpush3.bf16.xpose.msk.msra.mxu1 %vm731_vm3, %v584_v1 }
 0x108   :  { %587 = vmatprep.subr.bf16.mxu1 %v612_v22 }
 0x10f   :  { %590 = vmatpush3.bf16.xpose.msk.msra.mxu1 %vm731_vm3, %v588_v8 }
 0x110   :  { %591 = vmatprep.subr.bf16.mxu1 %v612_v22 }
 0x117   :  { %594 = vmatpush3.bf16.xpose.msk.msra.mxu1 %vm731_vm3, %v592_v15 }
 0x118   :  { %595 = vmatprep.subr.bf16.mxu1 %v612_v22 }
 0x11f   :  { %598 = vmatpush3.bf16.xpose.msk.msra.mxu1 %vm731_vm3, %v596_v19 }
 0x126   :  { %557 = vmatmul.mubr.msk.f32.vlgmr.msra.gmra.mrb[0].mxu1 %vm264_vm2, %v257_v20 }
 0x1f9   :  { %v382_v23 = vpop.f32.mrb[0].mxu1 }
 0x1fa   :  { %v383_v24 = vadd.f32 %v382_v23, %v262_v21  ;;  %v558_v25 = vpop.f32.mrb[1].mxu1 }
 0x1fc   :  { %v389_v26 = vand.u32 2147483647, %v383_v24  ;;  %v454_v27 = vmul.f32 -1.442695, %v383_v24  ;;  %v388_v42 = vmax.f32 %v383_v24, 0.0 }
 0x1fe   :  { %v390_v28 = vsub.f32 0.0, %v389_v26  ;;  %604 = vpow2.f32 %v454_v27 }
 0x200   :  { %v391_v29 = vmul.f32 1.442695, %v390_v28 }
 0x202   :  { %606 = vpow2.f32 %v391_v29 }
 0x208   :  { %v605_v22 = vpop.eup %604 }
 0x209   :  { %v406_v32 = vadd.f32 1.0, %v605_v22 }
 0x20c   :  { %v607_v30 = vpop.eup %606 }
 0x20d   :  { %v393_v31 = vadd.f32 1.0, %v607_v30  ;;  %v396_v33 = vmul.f32 -0.5, %v607_v30  ;;  %v399_v37 = vand.u32 2147483647, %v607_v30 }
 0x20f   :  { %608 = vlog2.f32 %v393_v31  ;;  %v397_v35 = vadd.f32 1.0, %v396_v33  ;;  %vm400_vm4 = vcmp.lt.f32.partialorder %v399_v37, 0.0004427343 }
 0x210   :  { %610 = vrcp.f32 %v406_v32 }
 0x211   :  { %v398_v40 = vmul.f32 %v607_v30, %v397_v35 }
 0x219   :  { %v609_v38 = vpop.eup %608 }
 0x21a   :  { %v395_v39 = vmul.f32 0.6931472, %v609_v38  ;;  %v611_v41 = vpop.eup %610 }
 0x21b   :  { %v412_v45 = vsel %vm411_vm5, %v611_v41, %v383_v24 }
 0x21c   :  { %v401_v43 = vsel %vm400_vm4, %v398_v40, %v395_v39 }
 0x21d   :  { %v402_v44 = vadd.f32 %v401_v43, %v388_v42 }
 0x21f   :  { %v413_v46 = vsel %vm410_vm6, %v402_v44, %v412_v45 }
 0x220   :  { %v414_v47 = vsel %vm409_vm7, %v383_v24, %v413_v46 }
 0x221   :  { %415 = vst [vmem:[%s770_s5] sm:$0xff] %v414_v47 }

</bundles_post_ra>
